<compile_context>
chip_gen: v7x
topology: tpu7x:2x2x1
jax: 0.10.0
libtpu: 0.0.40
codegen_flags: <defaults>
</compile_context>

<pallas_src>
import math

import jax
import jax.numpy as jnp
from jax.experimental import pallas as pl
from jax.experimental.pallas import tpu as pltpu


def _tpu_vmem_and_cores():
    """Best-effort query of per-TensorCore VMEM capacity and TC count."""
    vmem = 128 << 20
    try:
        info = pltpu.get_tpu_info()
        vmem = int(getattr(info, "vmem_capacity_bytes", vmem))
    except Exception:
        pass
    # v7x: 64 MiB VMEM per TensorCore, 2 TCs/chip.  v5e/v6e: 128 MiB, 1 TC.
    n_tc = 2 if vmem <= (64 << 20) else 1
    return vmem, n_tc


def _pick_tile_n(n_total, n_tc):
    if n_total < 256:
        # Tiny inputs: one tile, ceil to sublane multiple.
        return max(8, int(math.ceil(n_total / 8) * 8))
    if n_tc >= 2:
        # v7x: keep the grid at >= 2 steps so the "parallel" axis splits
        # across both TensorCores.
        if n_total >= 2048:
            return 512
        if n_total >= 1024:
            return 256
        return 128
    # v5e/v6e: single TensorCore -- just maximize the tile to amortize the
    # ~0.35 us per-grid-step overhead on this DMA-bound kernel.
    if n_total >= 2048:
        return 1024
    if n_total >= 1024:
        return 512
    return 256


def _multi_embed_kernel(ids_ref, w_ref, out_ref, hot_ref):
    # ids_ref : (TN, L) int32   token id per (position, level); -1 = padding
    # w_ref   : (L*K, D)        flattened embedding tables (compute dtype)
    # out_ref : (TN, D)         summed embeddings
    # hot_ref : (TN, L*K)       VMEM scratch holding the multi-hot matrix
    tn, n_levels = ids_ref.shape
    lk, _ = w_ref.shape
    n_tokens = lk // n_levels

    ids = ids_ref[...]                                               # one vld
    iota = jax.lax.broadcasted_iota(jnp.int32, (tn, n_tokens), 1)    # (TN, K)

    # Build the multi-hot directly in the flattened frame: level l's one-hot
    # lands at static lane offset l*K.  Sentinel id -1 never matches iota, so
    # padded levels / padded rows contribute exactly zero.
    for l in range(n_levels):                                        # L is small & static
        hot_ref[:, l * n_tokens:(l + 1) * n_tokens] = (
            iota == ids[:, l:l + 1]).astype(hot_ref.dtype)

    # One MXU matmul; the sum over quantizer levels is part of the L*K
    # contraction (no per-level accumulates / FIFO drains).
    out_ref[...] = jnp.dot(
        hot_ref[...], w_ref[...], preferred_element_type=jnp.float32
    ).astype(out_ref.dtype)


def _multi_embed_pallas(ids, w2, tile_n, vmem_limit_bytes, out_dtype,
                        weight_buffers):
    n_pad, n_levels = ids.shape
    lk, token_dim = w2.shape
    grid = (n_pad // tile_n,)

    w_spec_kwargs = {}
    if weight_buffers is not None:
        # Constant index_map -> the weight is resident across grid steps; a
        # second pipeline buffer would only waste VMEM.
        w_spec_kwargs["pipeline_mode"] = pl.Buffered(weight_buffers)
    w_spec = pl.BlockSpec((lk, token_dim), lambda i: (0, 0), **w_spec_kwargs)

    return pl.pallas_call(
        _multi_embed_kernel,
        out_shape=jax.ShapeDtypeStruct((n_pad, token_dim), out_dtype),
        grid_spec=pltpu.PrefetchScalarGridSpec(
            num_scalar_prefetch=0,
            grid=grid,
            in_specs=[
                pl.BlockSpec((tile_n, n_levels), lambda i: (i, 0)),
                w_spec,
            ],
            out_specs=pl.BlockSpec((tile_n, token_dim), lambda i: (i, 0)),
            scratch_shapes=[pltpu.VMEM((tile_n, lk), w2.dtype)],
        ),
        compiler_params=pltpu.CompilerParams(
            dimension_semantics=("parallel",),
            vmem_limit_bytes=vmem_limit_bytes,
        ),
    )(ids, w2)


class MultiEmbedding:
    """Sums embeddings over quantizer levels (JAX/Pallas port of the PyTorch module)."""

    def __init__(self, max_n_levels, n_tokens, token_dim, monolithic=False, *,
                 key, compute_dtype=jnp.bfloat16, output_dtype=jnp.float32):
        self.monolithic = monolithic
        self.max_n_levels = max_n_levels
        self.n_tokens = n_tokens
        self.token_dim = token_dim
        self.compute_dtype = compute_dtype   # one-hot is exact in bf16; acc stays f32
        self.output_dtype = output_dtype     # set bf16 to halve the HBM writeback
        # torch.randn equivalent, deterministic; parameter kept in f32
        self.weight = jax.random.normal(
            key, (max_n_levels, n_tokens, token_dim), dtype=jnp.float32
        )

    def __call__(self, x_list, quant_levels=None):
        if len(x_list) == 0:
            return []

        if self.monolithic:
            w = self.weight[:1] if quant_levels is None else self.weight[1:]
        else:
            w = self.weight

        n_levels, n_tokens, token_dim = w.shape
        lengths = [int(xi.shape[0]) for xi in x_list]

        # --- glue: pad each xi's level dim with sentinel -1 (no mask stream) ---
        ids_rows = []
        for xi in x_list:
            xi = xi.astype(jnp.int32)
            pad_l = n_levels - xi.shape[1]
            ids_rows.append(jnp.pad(xi, ((0, 0), (0, pad_l)), constant_values=-1))
        ids = jnp.concatenate(ids_rows, axis=0)                     # (N, L)
        n_total = ids.shape[0]

        # --- per-generation tiling + VMEM budget ---
        vmem_cap, n_tc = _tpu_vmem_and_cores()
        tile_n = _pick_tile_n(n_total, n_tc)
        n_pad = int(math.ceil(n_total / tile_n) * tile_n)
        if n_pad != n_total:
            ids = jnp.pad(ids, ((0, n_pad - n_total), (0, 0)), constant_values=-1)

        # --- flatten + narrow the weight once per call (outside the kernel) ---
        lk = n_levels * n_tokens
        w2 = w.reshape(lk, token_dim).astype(self.compute_dtype)    # (L*K, D)

        out_dtype = self.output_dtype
        c_item = jnp.dtype(self.compute_dtype).itemsize
        o_item = jnp.dtype(out_dtype).itemsize
        # Conservative budget (counts the weight double-buffered so the limit
        # stays valid if the double-buffered fallback path is taken).
        budget = (
            2 * lk * token_dim * c_item          # resident weight
            + 2 * tile_n * n_levels * 4          # ids tiles
            + 2 * tile_n * token_dim * o_item    # output tiles
            + tile_n * lk * c_item               # multi-hot VMEM scratch
            + tile_n * token_dim * 4             # f32 matmul result before cast
            + (4 << 20)                          # Mosaic internal scratch slack
        )
        # Cap against the real chip VMEM (48 MiB on v7x, 112 MiB on v5e/v6e),
        # never a fixed 64 MiB.
        vmem_limit = int(min(max(budget, 32 << 20), vmem_cap - (16 << 20)))

        try:
            out = _multi_embed_pallas(ids, w2, tile_n, vmem_limit, out_dtype,
                                      weight_buffers=1)
        except Exception:
            # Fallback for JAX builds without single-buffer pipeline_mode support.
            out = _multi_embed_pallas(ids, w2, tile_n, vmem_limit, out_dtype,
                                      weight_buffers=None)
        out = out[:n_total]                                          # (N, D)

        # --- split back into the list structure ---
        outs, start = [], 0
        for length in lengths:
            outs.append(out[start:start + length])
            start += length
        return outs


def _reference(w, x_list):
    # pure-JAX reproduction of the PyTorch einsum path, for verification
    n_levels, n_tokens, _ = w.shape
    padded = []
    for xi in x_list:
        oh = jax.nn.one_hot(xi.astype(jnp.int32), n_tokens, dtype=jnp.float32)  # (t, lv, K)
        pad_l = n_levels - oh.shape[1]
        oh = jnp.pad(oh, ((0, 0), (0, pad_l), (0, 0)))
        padded.append(oh)
    x = jnp.concatenate(padded, axis=0)                       # (N, L, K)
    full = jnp.einsum("lkd,nlk->nd", w, x)
    outs, start = [], 0
    for xi in x_list:
        outs.append(full[start:start + xi.shape[0]])
        start += xi.shape[0]
    return outs


if __name__ == "__main__":
    key = jax.random.PRNGKey(0)
    k_w, k_x1, k_x2 = jax.random.split(key, 3)

    max_n_levels = 4
    n_tokens = 32
    token_dim = 128

    emb = MultiEmbedding(max_n_levels, n_tokens, token_dim, monolithic=False, key=k_w)

    # two "sequences" with different numbers of quantizer levels, like VALL-E
    x1 = jax.random.randint(k_x1, (8, 4), 0, n_tokens, dtype=jnp.int32)  # (seq=8, levels=4)
    x2 = jax.random.randint(k_x2, (5, 2), 0, n_tokens, dtype=jnp.int32)  # (seq=5, levels=2)
    x_list = [x1, x2]

    outs = emb(x_list)
    outs = [jax.block_until_ready(o) for o in outs]

    # Tight check against the reference computed with bf16-rounded weights
    # (the one-hot side is exact in bf16; accumulation is f32 in both).
    w_bf16 = emb.weight.astype(jnp.bfloat16).astype(jnp.float32)
    refs_bf16 = _reference(w_bf16, x_list)
    # Loose check against the original full-f32 semantics (bf16 weight rounding).
    refs_f32 = _reference(emb.weight, x_list)

    for o, rb, rf in zip(outs, refs_bf16, refs_f32):
        assert o.shape == rb.shape and o.dtype == jnp.float32
        assert jnp.allclose(o, rb, rtol=1e-4, atol=1e-4), "mismatch vs bf16-weight reference"
        assert jnp.allclose(o, rf, rtol=5e-2, atol=1e-1), "mismatch vs f32 reference"

    print("KERNEL_OK")
</pallas_src>

<mosaic_0001>
module attributes {stable_mosaic.version = 11 : i64} {
  func.func @_multi_embed_kernel(%arg0: i32, %arg1: memref<16x4xi32, #tpu.memory_space<vmem>>, %arg2: memref<128x128xbf16, #tpu.memory_space<vmem>>, %arg3: memref<16x128xf32, #tpu.memory_space<vmem>>, %arg4: memref<16x128xbf16, #tpu.memory_space<vmem>>) attributes {dimension_semantics = [#tpu.dimension_semantics<parallel>], iteration_bounds = array<i64: 1>, scalar_prefetch = 0 : i64, scratch_operands = 1 : i64, tpu.core_type = #tpu.core_type<tc>, window_params = [{transform_indices = @transform_0, window_bounds = array<i64: 16, 4>}, {pipeline_mode = #tpu.pipeline_mode<synchronous>, transform_indices = @transform_1, window_bounds = array<i64: 128, 128>}, {transform_indices = @transform_2, window_bounds = array<i64: 16, 128>}]} {
    %c0 = arith.constant 0 : index
    %c0_0 = arith.constant 0 : index
    %0 = vector.load %arg1[%c0, %c0_0] : memref<16x4xi32, #tpu.memory_space<vmem>>, vector<16x4xi32>
    %1 = tpu.iota {dimensions = array<i32: 1>} : vector<16x32xi32>
    %2 = vector.extract_strided_slice %0 {offsets = [0, 0], sizes = [16, 1], strides = [1, 1]} : vector<16x4xi32> to vector<16x1xi32>
    %3 = vector.broadcast %2 : vector<16x1xi32> to vector<16x32xi32>
    %4 = arith.cmpi eq, %1, %3 : vector<16x32xi32>
    %5 = arith.extui %4 : vector<16x32xi1> to vector<16x32xi32>
    %6 = arith.sitofp %5 : vector<16x32xi32> to vector<16x32xf32>
    %7 = arith.truncf %6 : vector<16x32xf32> to vector<16x32xbf16>
    %c0_1 = arith.constant 0 : index
    %c0_2 = arith.constant 0 : index
    %8 = vector.load %arg4[%c0_1, %c0_2] : memref<16x128xbf16, #tpu.memory_space<vmem>>, vector<16x32xbf16>
    tpu.vector_store %arg4[%c0_1, %c0_2], %7 {strides = array<i32>} : memref<16x128xbf16, #tpu.memory_space<vmem>>, vector<16x32xbf16>,
    %9 = vector.extract_strided_slice %0 {offsets = [0, 1], sizes = [16, 1], strides = [1, 1]} : vector<16x4xi32> to vector<16x1xi32>
    %10 = vector.broadcast %9 : vector<16x1xi32> to vector<16x32xi32>
    %11 = arith.cmpi eq, %1, %10 : vector<16x32xi32>
    %12 = arith.extui %11 : vector<16x32xi1> to vector<16x32xi32>
    %13 = arith.sitofp %12 : vector<16x32xi32> to vector<16x32xf32>
    %14 = arith.truncf %13 : vector<16x32xf32> to vector<16x32xbf16>
    %c0_3 = arith.constant 0 : index
    %c32 = arith.constant 32 : index
    %15 = vector.load %arg4[%c0_3, %c32] : memref<16x128xbf16, #tpu.memory_space<vmem>>, vector<16x32xbf16>
    tpu.vector_store %arg4[%c0_3, %c32], %14 {strides = array<i32>} : memref<16x128xbf16, #tpu.memory_space<vmem>>, vector<16x32xbf16>,
    %16 = vector.extract_strided_slice %0 {offsets = [0, 2], sizes = [16, 1], strides = [1, 1]} : vector<16x4xi32> to vector<16x1xi32>
    %17 = vector.broadcast %16 : vector<16x1xi32> to vector<16x32xi32>
    %18 = arith.cmpi eq, %1, %17 : vector<16x32xi32>
    %19 = arith.extui %18 : vector<16x32xi1> to vector<16x32xi32>
    %20 = arith.sitofp %19 : vector<16x32xi32> to vector<16x32xf32>
    %21 = arith.truncf %20 : vector<16x32xf32> to vector<16x32xbf16>
    %c0_4 = arith.constant 0 : index
    %c64 = arith.constant 64 : index
    %22 = vector.load %arg4[%c0_4, %c64] : memref<16x128xbf16, #tpu.memory_space<vmem>>, vector<16x32xbf16>
    tpu.vector_store %arg4[%c0_4, %c64], %21 {strides = array<i32>} : memref<16x128xbf16, #tpu.memory_space<vmem>>, vector<16x32xbf16>,
    %23 = vector.extract_strided_slice %0 {offsets = [0, 3], sizes = [16, 1], strides = [1, 1]} : vector<16x4xi32> to vector<16x1xi32>
    %24 = vector.broadcast %23 : vector<16x1xi32> to vector<16x32xi32>
    %25 = arith.cmpi eq, %1, %24 : vector<16x32xi32>
    %26 = arith.extui %25 : vector<16x32xi1> to vector<16x32xi32>
    %27 = arith.sitofp %26 : vector<16x32xi32> to vector<16x32xf32>
    %28 = arith.truncf %27 : vector<16x32xf32> to vector<16x32xbf16>
    %c0_5 = arith.constant 0 : index
    %c96 = arith.constant 96 : index
    %29 = vector.load %arg4[%c0_5, %c96] : memref<16x128xbf16, #tpu.memory_space<vmem>>, vector<16x32xbf16>
    tpu.vector_store %arg4[%c0_5, %c96], %28 {strides = array<i32>} : memref<16x128xbf16, #tpu.memory_space<vmem>>, vector<16x32xbf16>,
    %c0_6 = arith.constant 0 : index
    %c0_7 = arith.constant 0 : index
    %30 = vector.load %arg4[%c0_6, %c0_7] : memref<16x128xbf16, #tpu.memory_space<vmem>>, vector<16x128xbf16>
    %c0_8 = arith.constant 0 : index
    %c0_9 = arith.constant 0 : index
    %31 = vector.load %arg2[%c0_8, %c0_9] : memref<128x128xbf16, #tpu.memory_space<vmem>>, vector<128x128xbf16>
    %cst = arith.constant dense<0.000000e+00> : vector<16x128xf32>
    %32 = tpu.matmul %30, %31, %cst {dimension_numbers = #tpu.dot_dimension_numbers<[1], [0], [0], [1], [0, 0, 1, 1], [], []>} : vector<16x128xbf16>, vector<128x128xbf16>, vector<16x128xf32> -> vector<16x128xf32>
    %c0_10 = arith.constant 0 : index
    %c0_11 = arith.constant 0 : index
    %33 = vector.load %arg3[%c0_10, %c0_11] : memref<16x128xf32, #tpu.memory_space<vmem>>, vector<16x128xf32>
    tpu.vector_store %arg3[%c0_10, %c0_11], %32 {strides = array<i32>} : memref<16x128xf32, #tpu.memory_space<vmem>>, vector<16x128xf32>,
    return
  }
  func.func @transform_0(%arg0: i32) -> (i32, i32) {
    %c0_i32 = arith.constant 0 : i32
    %c0_i32_0 = arith.constant 0 : i32
    return %arg0, %c0_i32 : i32, i32
  }
  func.func @transform_1(%arg0: i32) -> (i32, i32) {
    %c0_i32 = arith.constant 0 : i32
    %c0_i32_0 = arith.constant 0 : i32
    %c0_i32_1 = arith.constant 0 : i32
    return %c0_i32, %c0_i32_0 : i32, i32
  }
  func.func @transform_2(%arg0: i32) -> (i32, i32) {
    %c0_i32 = arith.constant 0 : i32
    %c0_i32_0 = arith.constant 0 : i32
    return %arg0, %c0_i32 : i32, i32
  }
}

module attributes {stable_mosaic.version = 11 : i64} {
  func.func @_multi_embed_kernel(%arg0: i32, %arg1: memref<16x4xi32, #tpu.memory_space<vmem>>, %arg2: memref<128x128xbf16, #tpu.memory_space<vmem>>, %arg3: memref<16x128xf32, #tpu.memory_space<vmem>>, %arg4: memref<16x128xbf16, #tpu.memory_space<vmem>>) attributes {dimension_semantics = [#tpu.dimension_semantics<parallel>], iteration_bounds = array<i64: 1>, scalar_prefetch = 0 : i64, scratch_operands = 1 : i64, tpu.core_type = #tpu.core_type<tc>, window_params = [{transform_indices = @transform_0, window_bounds = array<i64: 16, 4>}, {pipeline_mode = #tpu.pipeline_mode<synchronous>, transform_indices = @transform_1, window_bounds = array<i64: 128, 128>}, {transform_indices = @transform_2, window_bounds = array<i64: 16, 128>}]} {
    %c0 = arith.constant 0 : index
    %c0_0 = arith.constant 0 : index
    %0 = vector.load %arg1[%c0, %c0_0] : memref<16x4xi32, #tpu.memory_space<vmem>>, vector<16x4xi32>
    %1 = tpu.iota {dimensions = array<i32: 1>} : vector<16x32xi32>
    %2 = vector.extract_strided_slice %0 {offsets = [0, 0], sizes = [16, 1], strides = [1, 1]} : vector<16x4xi32> to vector<16x1xi32>
    %3 = vector.broadcast %2 : vector<16x1xi32> to vector<16x32xi32>
    %4 = arith.cmpi eq, %1, %3 : vector<16x32xi32>
    %5 = arith.extui %4 : vector<16x32xi1> to vector<16x32xi32>
    %6 = arith.sitofp %5 : vector<16x32xi32> to vector<16x32xf32>
    %7 = arith.truncf %6 : vector<16x32xf32> to vector<16x32xbf16>
    %c0_1 = arith.constant 0 : index
    %c0_2 = arith.constant 0 : index
    %8 = vector.load %arg4[%c0_1, %c0_2] : memref<16x128xbf16, #tpu.memory_space<vmem>>, vector<16x32xbf16>
    tpu.vector_store %arg4[%c0_1, %c0_2], %7 {strides = array<i32>} : memref<16x128xbf16, #tpu.memory_space<vmem>>, vector<16x32xbf16>,
    %9 = vector.extract_strided_slice %0 {offsets = [0, 1], sizes = [16, 1], strides = [1, 1]} : vector<16x4xi32> to vector<16x1xi32>
    %10 = vector.broadcast %9 : vector<16x1xi32> to vector<16x32xi32>
    %11 = arith.cmpi eq, %1, %10 : vector<16x32xi32>
    %12 = arith.extui %11 : vector<16x32xi1> to vector<16x32xi32>
    %13 = arith.sitofp %12 : vector<16x32xi32> to vector<16x32xf32>
    %14 = arith.truncf %13 : vector<16x32xf32> to vector<16x32xbf16>
    %c0_3 = arith.constant 0 : index
    %c32 = arith.constant 32 : index
    %15 = vector.load %arg4[%c0_3, %c32] : memref<16x128xbf16, #tpu.memory_space<vmem>>, vector<16x32xbf16>
    tpu.vector_store %arg4[%c0_3, %c32], %14 {strides = array<i32>} : memref<16x128xbf16, #tpu.memory_space<vmem>>, vector<16x32xbf16>,
    %16 = vector.extract_strided_slice %0 {offsets = [0, 2], sizes = [16, 1], strides = [1, 1]} : vector<16x4xi32> to vector<16x1xi32>
    %17 = vector.broadcast %16 : vector<16x1xi32> to vector<16x32xi32>
    %18 = arith.cmpi eq, %1, %17 : vector<16x32xi32>
    %19 = arith.extui %18 : vector<16x32xi1> to vector<16x32xi32>
    %20 = arith.sitofp %19 : vector<16x32xi32> to vector<16x32xf32>
    %21 = arith.truncf %20 : vector<16x32xf32> to vector<16x32xbf16>
    %c0_4 = arith.constant 0 : index
    %c64 = arith.constant 64 : index
    %22 = vector.load %arg4[%c0_4, %c64] : memref<16x128xbf16, #tpu.memory_space<vmem>>, vector<16x32xbf16>
    tpu.vector_store %arg4[%c0_4, %c64], %21 {strides = array<i32>} : memref<16x128xbf16, #tpu.memory_space<vmem>>, vector<16x32xbf16>,
    %23 = vector.extract_strided_slice %0 {offsets = [0, 3], sizes = [16, 1], strides = [1, 1]} : vector<16x4xi32> to vector<16x1xi32>
    %24 = vector.broadcast %23 : vector<16x1xi32> to vector<16x32xi32>
    %25 = arith.cmpi eq, %1, %24 : vector<16x32xi32>
    %26 = arith.extui %25 : vector<16x32xi1> to vector<16x32xi32>
    %27 = arith.sitofp %26 : vector<16x32xi32> to vector<16x32xf32>
    %28 = arith.truncf %27 : vector<16x32xf32> to vector<16x32xbf16>
    %c0_5 = arith.constant 0 : index
    %c96 = arith.constant 96 : index
    %29 = vector.load %arg4[%c0_5, %c96] : memref<16x128xbf16, #tpu.memory_space<vmem>>, vector<16x32xbf16>
    tpu.vector_store %arg4[%c0_5, %c96], %28 {strides = array<i32>} : memref<16x128xbf16, #tpu.memory_space<vmem>>, vector<16x32xbf16>,
    %c0_6 = arith.constant 0 : index
    %c0_7 = arith.constant 0 : index
    %30 = vector.load %arg4[%c0_6, %c0_7] : memref<16x128xbf16, #tpu.memory_space<vmem>>, vector<16x128xbf16>
    %c0_8 = arith.constant 0 : index
    %c0_9 = arith.constant 0 : index
    %31 = vector.load %arg2[%c0_8, %c0_9] : memref<128x128xbf16, #tpu.memory_space<vmem>>, vector<128x128xbf16>
    %cst = arith.constant dense<0.000000e+00> : vector<16x128xf32>
    %32 = tpu.matmul %30, %31, %cst {dimension_numbers = #tpu.dot_dimension_numbers<[1], [0], [0], [1], [0, 0, 1, 1], [], []>} : vector<16x128xbf16>, vector<128x128xbf16>, vector<16x128xf32> -> vector<16x128xf32>
    %c0_10 = arith.constant 0 : index
    %c0_11 = arith.constant 0 : index
    %33 = vector.load %arg3[%c0_10, %c0_11] : memref<16x128xf32, #tpu.memory_space<vmem>>, vector<16x128xf32>
    tpu.vector_store %arg3[%c0_10, %c0_11], %32 {strides = array<i32>} : memref<16x128xf32, #tpu.memory_space<vmem>>, vector<16x128xf32>,
    return
  }
  func.func @transform_0(%arg0: i32) -> (i32, i32) {
    %c0_i32 = arith.constant 0 : i32
    %c0_i32_0 = arith.constant 0 : i32
    return %arg0, %c0_i32 : i32, i32
  }
  func.func @transform_1(%arg0: i32) -> (i32, i32) {
    %c0_i32 = arith.constant 0 : i32
    %c0_i32_0 = arith.constant 0 : i32
    %c0_i32_1 = arith.constant 0 : i32
    return %c0_i32, %c0_i32_0 : i32, i32
  }
  func.func @transform_2(%arg0: i32) -> (i32, i32) {
    %c0_i32 = arith.constant 0 : i32
    %c0_i32_0 = arith.constant 0 : i32
    return %arg0, %c0_i32 : i32, i32
  }
}

</mosaic_0001>

<bundles_post_ra>
// kernel: tpu_custom_call.1
= control target key start
LH: loop header
LB: loop body
LE: loop exit
PB: predicated region body
PF: predicated region fallthrough
CT: control target
= control target key end

     0   :  { %7 = vsyncpa [#allocation4], 0  ;;  %s429_s0 = inlined_call_operand.vmem [shape: s32[16,4], index: 0, kind: input, shape index: {}]   ;;  %s430_s1 = inlined_call_operand.hbm [shape: bf16[128,128], index: 1, kind: input, shape index: {}]   ;;  %s431_s2 = inlined_call_operand.hbm [shape: f32[16,128], index: 2, kind: output, shape index: {}]  }
   0x1   :  { %8 = vsyncpa [#allocation5], 0  ;;  %s350_s9 = smov [#allocation3]   ;;  %s302_s13 = scalar_lea.hbm %s430_s1, 1024 }
   0x2   :  { %s16_s10 = sshll.u32 %s350_s9, 4  ;;  %p303_p0 = scmp.ne.s32.totalorder %s430_s1, %s302_s13  ;;  %s17_s10 = int_to_ptr.vmem [resolvable:$true] %s16_s10 }
   0x3   :  { %p306_p1 = scmp.lt.u32.totalorder %s302_s13, %s430_s1 }
   0x5   :  { %p308_p2 = pnand %p306_p1, %p303_p0 }
   0x7   :  { %311 = shalt.err (!%p308_p2)
}
   0x8   :  { %s312_s18 = scalar_lea.vmem %s17_s10, 1024  ;;  %p317_p4 = scmp.lt.s32.totalorder %s17_s10, %s17_s10 }
   0x9   :  { %p313_p3 = scmp.ne.s32.totalorder %s17_s10, %s312_s18  ;;  %p318_p5 = scmp.lt.s32.totalorder %s312_s18, %s312_s18 }
   0xb   :  { %p319_p6 = por %p318_p5, %p317_p4 }
   0xd   :  { %p320_p7 = pnand %p319_p6, %p313_p3 }
   0xf   :  { %323 = shalt.err (!%p320_p7)
}
  0x10   :  { %s351_s19 = smov 64   ;;  %s352_s20 = smov 4  }
  0x11   :  { %22 = dma.hbm_to_vmem [thread:$0]  %s430_s1, 1024, %s17_s10, [#allocation4], %s351_s19, %s351_s19, %s352_s20  }
  0x12   :  { %346 = dma.done.wait [#allocation4], 1024  }
  0x13   :  { %347 = vsyncadd [#allocation4], 4294966272  ;;  %v353_v0 = vmov 2   ;;  %v354_v1 = vmov 1   ;;  %v355_v2 = vmov 0.0   ;;  %v27_v3 = vld [vmem:[%s429_s0] sm:$0xff]  ;;  %v29_v12 = vlaneseq }
  0x14   :  { %288 = vset.pattern.permute.xlu1 %v353_v0  ;;  %287 = vset.pattern.permute.xlu0 %v354_v1  ;;  %v28_v4 = vld [vmem:[%s429_s0 + $0x8] sm:$0xff]  ;;  %v356_v5 = vmov 3   ;;  %v357_v6 = vmov 0   ;;  %v295_v8 = vld [vmem:[#allocation3 + $0x8] sm:$0xff]   ;;  %v296_v9 = vld [vmem:[#allocation3 + $0x10] sm:$0xff]   ;;  %vm358_vm0 = vmmov 0  }
  0x15   :  { %253 = vmatprep.subr.bf16.mxu0 %v355_v2  ;;  %66 = vperm.xlu1 %288, %v27_v3   ;;  %v294_v7 = vld [vmem:[#allocation3] sm:$0xff]   ;;  %v297_v10 = vld [vmem:[#allocation3 + $0x18] sm:$0xff]   ;;  %v299_v13 = vld [vmem:[#allocation3 + $0x28] sm:$0xff]   ;;  %v30_v14 = vand.u32 127, %v29_v12  ;;  %s359_s0 = smov 32   ;;  %s360_s1 = smov 96  }
  0x16   :  { %47 = vperm.xlu0 %287, %v27_v3   ;;  %254 = vmatpush3.bf16.msra.mxu0 %v294_v7  ;;  %v298_v11 = vld [vmem:[#allocation3 + $0x20] sm:$0xff]   ;;  %v300_v17 = vld [vmem:[#allocation3 + $0x30] sm:$0xff]   ;;  %v301_v18 = vld [vmem:[#allocation3 + $0x38] sm:$0xff]   ;;  %vm44_vm9 = vcmask 261120   ;;  %vm63_vm10 = vcmask 523520   ;;  %vm82_vm11 = vcmask 785920  }
  0x17   :  { %255 = vmatprep.subr.bf16.mxu0 %v355_v2  ;;  %269 = vmatprep.mubr.msk.bf16.mxu0 %vm358_vm0, %v355_v2  ;;  %vm101_vm12 = vcmask 1048320   ;;  %s361_s27 = smov [#allocation6]  }
  0x18   :  { %s216_s28 = sshll.u32 %s361_s27, 4  ;;  %s217_s28 = int_to_ptr.vmem [resolvable:$true] %s216_s28 }
  0x19   :  { %69 = vperm.xlu1 %288, %v28_v4   ;;  %s324_s29 = scalar_lea.vmem %s217_s28, 256  ;;  %p329_p9 = scmp.lt.s32.totalorder %s217_s28, %s217_s28 }
  0x1a   :  { %50 = vperm.xlu0 %287, %v28_v4   ;;  %256 = vmatpush3.bf16.msra.mxu0 %v295_v8  ;;  %p325_p8 = scmp.ne.s32.totalorder %s217_s28, %s324_s29  ;;  %p330_p10 = scmp.lt.s32.totalorder %s324_s29, %s324_s29 }
  0x1b   :  { %257 = vmatprep.subr.bf16.mxu0 %v355_v2 }
  0x1c   :  { %p331_p11 = por %p330_p10, %p329_p9 }
  0x1d   :  { %290 = vset.pattern.permute.xlu1 %v356_v5 }
  0x1e   :  { %289 = vset.pattern.permute.xlu0 %v356_v5  ;;  %88 = vperm.xlu1 %290, %v28_v4   ;;  %p332_p12 = pnand %p331_p11, %p325_p8 }
  0x1f   :  { %85 = vperm.xlu0 %289, %v27_v3   ;;  %258 = vmatpush3.bf16.msra.mxu0 %v296_v9 }
  0x20   :  { %259 = vmatprep.subr.bf16.mxu0 %v355_v2 }
  0x22   :  { %291 = vset.pattern.permute.xlu1 %v357_v6 }
  0x23   :  { %292 = vset.pattern.permute.xlu0 %v357_v6  ;;  %32 = vperm.xlu1 %291, %v27_v3  }
  0x24   :  { %35 = vperm.xlu0 %292, %v28_v4   ;;  %260 = vmatpush3.bf16.msra.mxu0 %v297_v10 }
  0x25   :  { %261 = vmatprep.subr.bf16.mxu0 %v355_v2 }
  0x28   :  { %293 = vset.pattern.permute.xlu0 %v356_v5  ;;  %262 = vmatpush3.bf16.msra.mxu0 %v298_v11 }
  0x29   :  { %263 = vmatprep.subr.bf16.mxu0 %v355_v2 }
  0x2c   :  { %264 = vmatpush3.bf16.msra.mxu0 %v299_v13 }
  0x2d   :  { %265 = vmatprep.subr.bf16.mxu0 %v355_v2 }
  0x30   :  { %266 = vmatpush3.bf16.msra.mxu0 %v300_v17 }
  0x31   :  { %267 = vmatprep.subr.bf16.mxu0 %v355_v2 }
  0x34   :  { %268 = vmatpush3.bf16.msra.mxu0 %v301_v18 }
  0x94   :  { %v67_v15 = vpop.permute.xlu1 %66 }
  0x95   :  { %v48_v16 = vpop.permute.xlu0 %47  ;;  %vm71_vm4 = vcmp.eq.s32.totalorder %v30_v14, %v67_v15 }
  0x96   :  { %vm52_vm1 = vcmp.eq.s32.totalorder %v30_v14, %v48_v16  ;;  %v232_v27 = vsel %vm71_vm4, 1.0, %v355_v2 }
  0x97   :  { %v230_v21 = vsel %vm52_vm1, 1.0, %v355_v2 }
  0x98   :  { %v70_v19 = vpop.permute.xlu1 %69 }
  0x99   :  { %v51_v20 = vpop.permute.xlu0 %50  ;;  %vm72_vm2 = vcmp.eq.s32.totalorder %v30_v14, %v70_v19 }
  0x9a   :  { %vm53_vm3 = vcmp.eq.s32.totalorder %v30_v14, %v51_v20  ;;  %v233_v24 = vsel %vm72_vm2, 1.0, %v355_v2 }
  0x9b   :  { %v231_v22 = vsel %vm53_vm3, 1.0, %v355_v2  ;;  %v77_v30 = vpack.c.bf16 %v233_v24, %v232_v27 }
  0x9c   :  { %v58_v23 = vpack.c.bf16 %v231_v22, %v230_v21 }
  0x9d   :  { %v89_v25 = vpop.permute.xlu1 %88 }
  0x9e   :  { %60 = vrot.lane.b32.xlu1 %v58_v23, %s359_s0  ;;  %v86_v26 = vpop.permute.xlu0 %85  ;;  %vm91_vm5 = vcmp.eq.s32.totalorder %v30_v14, %v89_v25 }
  0x9f   :  { %vm90_vm6 = vcmp.eq.s32.totalorder %v30_v14, %v86_v26  ;;  %v235_v28 = vsel %vm91_vm5, 1.0, %v355_v2 }
  0xa0   :  { %v234_v29 = vsel %vm90_vm6, 1.0, %v355_v2 }
  0xa1   :  { %v96_v31 = vpack.c.bf16 %v235_v28, %v234_v29 }
  0xa2   :  { %79 = vrot.lane.b32.xlu1 %v77_v30, %s351_s19  ;;  %v33_v32 = vpop.permute.xlu1 %32 }
  0xa3   :  { %98 = vrot.lane.b32.xlu0 %v96_v31, %s360_s1  ;;  %v36_v33 = vpop.permute.xlu0 %35  ;;  %vm37_vm7 = vcmp.eq.s32.totalorder %v30_v14, %v33_v32 }
  0xa4   :  { %vm38_vm8 = vcmp.eq.s32.totalorder %v30_v14, %v36_v33  ;;  %v228_v34 = vsel %vm37_vm7, 1.0, %v355_v2 }
  0xa5   :  { %v229_v35 = vsel %vm38_vm8, 1.0, %v355_v2 }
  0xa6   :  { %v43_v36 = vpack.c.bf16 %v229_v35, %v228_v34 }
  0xa8   :  { %45 = vst.msk [vmem:[#allocation2] sm:$0xff] %vm44_vm9, %v43_v36 }
 0x110   :  { %v61_v37 = vpop.permute.xlu1 %60 }
 0x111   :  { %64 = vst.msk [vmem:[#allocation2] sm:$0xff] %vm63_vm10, %v61_v37 }
 0x114   :  { %v80_v38 = vpop.permute.xlu1 %79 }
 0x115   :  { %83 = vst.msk [vmem:[#allocation2] sm:$0xff] %vm82_vm11, %v80_v38  ;;  %v99_v39 = vpop.permute.xlu0 %98 }
 0x116   :  { %102 = vst.msk [vmem:[#allocation2] sm:$0xff] %vm101_vm12, %v99_v39 }
 0x11d   :  { %v103_v40 = vld [vmem:[#allocation2] sm:$0xff] }
 0x11e   :  { %270 = vmatmul.mubr.bf16.vlgmr.msra.gmra.mrb[0].mxu0 %v103_v40 }
 0x1f1   :  { %v202_v41 = vpop.f32.mrb[0].mxu0 }
 0x1f2   :  { %209 = vst [vmem:[#allocation6] sm:$0xff] %v202_v41  ;;  %v271_v42 = vpop.f32.mrb[1].mxu0 }
 0x1f3   :  { %v205_v43 = vpop.f32.mrb[2].mxu0 }
 0x1f4   :  { %210 = vst [vmem:[#allocation6 + $0x8] sm:$0xff] %v205_v43  ;;  %v272_v44 = vpop.f32.mrb[3].mxu0 }
 0x1f5   :  { %335 = shalt.err (!%p332_p12)
}
 0x1f6   :  { %s336_s4 = scalar_lea.hbm %s431_s2, 256 }
 0x1f7   :  { %p337_p13 = scmp.ne.s32.totalorder %s431_s2, %s336_s4  ;;  %p340_p0 = scmp.lt.u32.totalorder %s336_s4, %s431_s2 }
 0x1f9   :  { %p342_p1 = pnand %p340_p0, %p337_p13 }
 0x1fb   :  { %345 = shalt.err (!%p342_p1)
}
 0x1fc   :  { %s362_s9 = smov 128   ;;  %s363_s10 = smov 8  }
 0x1fd   :  { %222 = dma.vmem_to_hbm [thread:$0]  %s217_s28, 256, %s431_s2, [#allocation5], %s362_s9, %s362_s9, %s363_s10  }
 0x1fe   :  { %348 = dma.done.wait [#allocation5], 256  }
 0x1ff   :  { %349 = vsyncadd [#allocation5], 4294967040 }
 0x200   :  { %226 = vsyncpa [#allocation4], 1 }
 0x201   :  { %227 = vsyncpa [#allocation5], 1 }

// kernel: tpu_custom_call.1
= control target key start
LH: loop header
LB: loop body
LE: loop exit
PB: predicated region body
PF: predicated region fallthrough
CT: control target
= control target key end

     0   :  { %7 = vsyncpa [#allocation4], 0  ;;  %s429_s0 = inlined_call_operand.vmem [shape: s32[16,4], index: 0, kind: input, shape index: {}]   ;;  %s430_s1 = inlined_call_operand.hbm [shape: bf16[128,128], index: 1, kind: input, shape index: {}]   ;;  %s431_s2 = inlined_call_operand.hbm [shape: f32[16,128], index: 2, kind: output, shape index: {}]  }
   0x1   :  { %8 = vsyncpa [#allocation5], 0  ;;  %s350_s9 = smov [#allocation3]   ;;  %s302_s13 = scalar_lea.hbm %s430_s1, 1024 }
   0x2   :  { %s16_s10 = sshll.u32 %s350_s9, 4  ;;  %p303_p0 = scmp.ne.s32.totalorder %s430_s1, %s302_s13  ;;  %s17_s10 = int_to_ptr.vmem [resolvable:$true] %s16_s10 }
   0x3   :  { %p306_p1 = scmp.lt.u32.totalorder %s302_s13, %s430_s1 }
   0x5   :  { %p308_p2 = pnand %p306_p1, %p303_p0 }
   0x7   :  { %311 = shalt.err (!%p308_p2)
}
   0x8   :  { %s312_s18 = scalar_lea.vmem %s17_s10, 1024  ;;  %p317_p4 = scmp.lt.s32.totalorder %s17_s10, %s17_s10 }
   0x9   :  { %p313_p3 = scmp.ne.s32.totalorder %s17_s10, %s312_s18  ;;  %p318_p5 = scmp.lt.s32.totalorder %s312_s18, %s312_s18 }
   0xb   :  { %p319_p6 = por %p318_p5, %p317_p4 }
   0xd   :  { %p320_p7 = pnand %p319_p6, %p313_p3 }
   0xf   :  { %323 = shalt.err (!%p320_p7)
}
  0x10   :  { %s351_s19 = smov 64   ;;  %s352_s20 = smov 4  }
  0x11   :  { %22 = dma.hbm_to_vmem [thread:$0]  %s430_s1, 1024, %s17_s10, [#allocation4], %s351_s19, %s351_s19, %s352_s20  }
  0x12   :  { %346 = dma.done.wait [#allocation4], 1024  }
  0x13   :  { %347 = vsyncadd [#allocation4], 4294966272  ;;  %v353_v0 = vmov 2   ;;  %v354_v1 = vmov 1   ;;  %v355_v2 = vmov 0.0   ;;  %v27_v3 = vld [vmem:[%s429_s0] sm:$0xff]  ;;  %v29_v12 = vlaneseq }
  0x14   :  { %288 = vset.pattern.permute.xlu1 %v353_v0  ;;  %287 = vset.pattern.permute.xlu0 %v354_v1  ;;  %v28_v4 = vld [vmem:[%s429_s0 + $0x8] sm:$0xff]  ;;  %v356_v5 = vmov 3   ;;  %v357_v6 = vmov 0   ;;  %v295_v8 = vld [vmem:[#allocation3 + $0x8] sm:$0xff]   ;;  %v296_v9 = vld [vmem:[#allocation3 + $0x10] sm:$0xff]   ;;  %vm358_vm0 = vmmov 0  }
  0x15   :  { %253 = vmatprep.subr.bf16.mxu0 %v355_v2  ;;  %66 = vperm.xlu1 %288, %v27_v3   ;;  %v294_v7 = vld [vmem:[#allocation3] sm:$0xff]   ;;  %v297_v10 = vld [vmem:[#allocation3 + $0x18] sm:$0xff]   ;;  %v299_v13 = vld [vmem:[#allocation3 + $0x28] sm:$0xff]   ;;  %v30_v14 = vand.u32 127, %v29_v12  ;;  %s359_s0 = smov 32   ;;  %s360_s1 = smov 96  }
  0x16   :  { %47 = vperm.xlu0 %287, %v27_v3   ;;  %254 = vmatpush3.bf16.msra.mxu0 %v294_v7  ;;  %v298_v11 = vld [vmem:[#allocation3 + $0x20] sm:$0xff]   ;;  %v300_v17 = vld [vmem:[#allocation3 + $0x30] sm:$0xff]   ;;  %v301_v18 = vld [vmem:[#allocation3 + $0x38] sm:$0xff]   ;;  %vm44_vm9 = vcmask 261120   ;;  %vm63_vm10 = vcmask 523520   ;;  %vm82_vm11 = vcmask 785920  }
  0x17   :  { %255 = vmatprep.subr.bf16.mxu0 %v355_v2  ;;  %269 = vmatprep.mubr.msk.bf16.mxu0 %vm358_vm0, %v355_v2  ;;  %vm101_vm12 = vcmask 1048320   ;;  %s361_s27 = smov [#allocation6]  }
  0x18   :  { %s216_s28 = sshll.u32 %s361_s27, 4  ;;  %s217_s28 = int_to_ptr.vmem [resolvable:$true] %s216_s28 }
  0x19   :  { %69 = vperm.xlu1 %288, %v28_v4   ;;  %s324_s29 = scalar_lea.vmem %s217_s28, 256  ;;  %p329_p9 = scmp.lt.s32.totalorder %s217_s28, %s217_s28 }
  0x1a   :  { %50 = vperm.xlu0 %287, %v28_v4   ;;  %256 = vmatpush3.bf16.msra.mxu0 %v295_v8  ;;  %p325_p8 = scmp.ne.s32.totalorder %s217_s28, %s324_s29  ;;  %p330_p10 = scmp.lt.s32.totalorder %s324_s29, %s324_s29 }
  0x1b   :  { %257 = vmatprep.subr.bf16.mxu0 %v355_v2 }
  0x1c   :  { %p331_p11 = por %p330_p10, %p329_p9 }
  0x1d   :  { %290 = vset.pattern.permute.xlu1 %v356_v5 }
  0x1e   :  { %289 = vset.pattern.permute.xlu0 %v356_v5  ;;  %88 = vperm.xlu1 %290, %v28_v4   ;;  %p332_p12 = pnand %p331_p11, %p325_p8 }
  0x1f   :  { %85 = vperm.xlu0 %289, %v27_v3   ;;  %258 = vmatpush3.bf16.msra.mxu0 %v296_v9 }
  0x20   :  { %259 = vmatprep.subr.bf16.mxu0 %v355_v2 }
  0x22   :  { %291 = vset.pattern.permute.xlu1 %v357_v6 }
  0x23   :  { %292 = vset.pattern.permute.xlu0 %v357_v6  ;;  %32 = vperm.xlu1 %291, %v27_v3  }
  0x24   :  { %35 = vperm.xlu0 %292, %v28_v4   ;;  %260 = vmatpush3.bf16.msra.mxu0 %v297_v10 }
  0x25   :  { %261 = vmatprep.subr.bf16.mxu0 %v355_v2 }
  0x28   :  { %293 = vset.pattern.permute.xlu0 %v356_v5  ;;  %262 = vmatpush3.bf16.msra.mxu0 %v298_v11 }
  0x29   :  { %263 = vmatprep.subr.bf16.mxu0 %v355_v2 }
  0x2c   :  { %264 = vmatpush3.bf16.msra.mxu0 %v299_v13 }
  0x2d   :  { %265 = vmatprep.subr.bf16.mxu0 %v355_v2 }
  0x30   :  { %266 = vmatpush3.bf16.msra.mxu0 %v300_v17 }
  0x31   :  { %267 = vmatprep.subr.bf16.mxu0 %v355_v2 }
  0x34   :  { %268 = vmatpush3.bf16.msra.mxu0 %v301_v18 }
  0x94   :  { %v67_v15 = vpop.permute.xlu1 %66 }
  0x95   :  { %v48_v16 = vpop.permute.xlu0 %47  ;;  %vm71_vm4 = vcmp.eq.s32.totalorder %v30_v14, %v67_v15 }
  0x96   :  { %vm52_vm1 = vcmp.eq.s32.totalorder %v30_v14, %v48_v16  ;;  %v232_v27 = vsel %vm71_vm4, 1.0, %v355_v2 }
  0x97   :  { %v230_v21 = vsel %vm52_vm1, 1.0, %v355_v2 }
  0x98   :  { %v70_v19 = vpop.permute.xlu1 %69 }
  0x99   :  { %v51_v20 = vpop.permute.xlu0 %50  ;;  %vm72_vm2 = vcmp.eq.s32.totalorder %v30_v14, %v70_v19 }
  0x9a   :  { %vm53_vm3 = vcmp.eq.s32.totalorder %v30_v14, %v51_v20  ;;  %v233_v24 = vsel %vm72_vm2, 1.0, %v355_v2 }
  0x9b   :  { %v231_v22 = vsel %vm53_vm3, 1.0, %v355_v2  ;;  %v77_v30 = vpack.c.bf16 %v233_v24, %v232_v27 }
  0x9c   :  { %v58_v23 = vpack.c.bf16 %v231_v22, %v230_v21 }
  0x9d   :  { %v89_v25 = vpop.permute.xlu1 %88 }
  0x9e   :  { %60 = vrot.lane.b32.xlu1 %v58_v23, %s359_s0  ;;  %v86_v26 = vpop.permute.xlu0 %85  ;;  %vm91_vm5 = vcmp.eq.s32.totalorder %v30_v14, %v89_v25 }
  0x9f   :  { %vm90_vm6 = vcmp.eq.s32.totalorder %v30_v14, %v86_v26  ;;  %v235_v28 = vsel %vm91_vm5, 1.0, %v355_v2 }
  0xa0   :  { %v234_v29 = vsel %vm90_vm6, 1.0, %v355_v2 }
  0xa1   :  { %v96_v31 = vpack.c.bf16 %v235_v28, %v234_v29 }
  0xa2   :  { %79 = vrot.lane.b32.xlu1 %v77_v30, %s351_s19  ;;  %v33_v32 = vpop.permute.xlu1 %32 }
  0xa3   :  { %98 = vrot.lane.b32.xlu0 %v96_v31, %s360_s1  ;;  %v36_v33 = vpop.permute.xlu0 %35  ;;  %vm37_vm7 = vcmp.eq.s32.totalorder %v30_v14, %v33_v32 }
  0xa4   :  { %vm38_vm8 = vcmp.eq.s32.totalorder %v30_v14, %v36_v33  ;;  %v228_v34 = vsel %vm37_vm7, 1.0, %v355_v2 }
  0xa5   :  { %v229_v35 = vsel %vm38_vm8, 1.0, %v355_v2 }
  0xa6   :  { %v43_v36 = vpack.c.bf16 %v229_v35, %v228_v34 }
  0xa8   :  { %45 = vst.msk [vmem:[#allocation2] sm:$0xff] %vm44_vm9, %v43_v36 }
 0x110   :  { %v61_v37 = vpop.permute.xlu1 %60 }
 0x111   :  { %64 = vst.msk [vmem:[#allocation2] sm:$0xff] %vm63_vm10, %v61_v37 }
 0x114   :  { %v80_v38 = vpop.permute.xlu1 %79 }
 0x115   :  { %83 = vst.msk [vmem:[#allocation2] sm:$0xff] %vm82_vm11, %v80_v38  ;;  %v99_v39 = vpop.permute.xlu0 %98 }
 0x116   :  { %102 = vst.msk [vmem:[#allocation2] sm:$0xff] %vm101_vm12, %v99_v39 }
 0x11d   :  { %v103_v40 = vld [vmem:[#allocation2] sm:$0xff] }
 0x11e   :  { %270 = vmatmul.mubr.bf16.vlgmr.msra.gmra.mrb[0].mxu0 %v103_v40 }
 0x1f1   :  { %v202_v41 = vpop.f32.mrb[0].mxu0 }
 0x1f2   :  { %209 = vst [vmem:[#allocation6] sm:$0xff] %v202_v41  ;;  %v271_v42 = vpop.f32.mrb[1].mxu0 }
 0x1f3   :  { %v205_v43 = vpop.f32.mrb[2].mxu0 }
 0x1f4   :  { %210 = vst [vmem:[#allocation6 + $0x8] sm:$0xff] %v205_v43  ;;  %v272_v44 = vpop.f32.mrb[3].mxu0 }
 0x1f5   :  { %335 = shalt.err (!%p332_p12)
}
 0x1f6   :  { %s336_s4 = scalar_lea.hbm %s431_s2, 256 }
 0x1f7   :  { %p337_p13 = scmp.ne.s32.totalorder %s431_s2, %s336_s4  ;;  %p340_p0 = scmp.lt.u32.totalorder %s336_s4, %s431_s2 }
 0x1f9   :  { %p342_p1 = pnand %p340_p0, %p337_p13 }
 0x1fb   :  { %345 = shalt.err (!%p342_p1)
}
 0x1fc   :  { %s362_s9 = smov 128   ;;  %s363_s10 = smov 8  }
 0x1fd   :  { %222 = dma.vmem_to_hbm [thread:$0]  %s217_s28, 256, %s431_s2, [#allocation5], %s362_s9, %s362_s9, %s363_s10  }
 0x1fe   :  { %348 = dma.done.wait [#allocation5], 256  }
 0x1ff   :  { %349 = vsyncadd [#allocation5], 4294967040 }
 0x200   :  { %226 = vsyncpa [#allocation4], 1 }
 0x201   :  { %227 = vsyncpa [#allocation5], 1 }

</bundles_post_ra>
